<compile_context>
chip_gen: v6e
topology: v6e:2x2x1
jax: 0.10.0
libtpu: 0.0.40
codegen_flags: <defaults>
</compile_context>

<pallas_src>
import jax
import jax.numpy as jnp
from jax.experimental import pallas as pl
from jax.experimental.pallas import tpu as pltpu


# ---------------------------------------------------------------------------
# Kernel
# ---------------------------------------------------------------------------
_NT_DIMS = (((1,), (1,)), ((), ()))   # contract last dim of both operands (A @ B^T)


def ctr_kernel(x_ref, w1_ref, b1_ref, w2_ref, b2_ref, w3_ref, b3_ref, o_ref):
    # x block arrives in its native (tile_b, D) f32 layout; cast to bf16 on the
    # VPU (hidden behind the DMA) and contract the last dims so the batch ends
    # up on the lane axis of every activation — no transposes anywhere.
    xb = x_ref[...].astype(jnp.bfloat16)                       # (tile_b, D)

    # Layer 1: (H1, D) · (tile_b, D)^T -> (H1, tile_b), bf16 MXU, f32 acc.
    h1 = jax.lax.dot_general(w1_ref[...], xb, _NT_DIMS,
                             preferred_element_type=jnp.float32)
    h1 = jnp.maximum(h1 + b1_ref[...], 0.0)                    # bias col broadcasts over lanes

    # Layer 2: (H2, H1) @ (H1, tile_b) -> (H2, tile_b), bf16 MXU, f32 acc.
    h2 = jnp.dot(w2_ref[...], h1.astype(w2_ref.dtype),
                 preferred_element_type=jnp.float32)
    h2 = jnp.maximum(h2 + b2_ref[...], 0.0)

    # Layer 3 (out_features = 1): VPU multiply + sublane reduction -> (1, tile_b),
    # already lane-dense for a full-width vst.
    logits = jnp.sum(h2 * w3_ref[...], axis=0, keepdims=True) + b3_ref[...]

    # sigmoid = 1 / (1 + exp(-z)): exp on the EUP, approx reciprocal on the EUP.
    o_ref[...] = pl.reciprocal(1.0 + jnp.exp(-logits), approx=True).astype(o_ref.dtype)


# ---------------------------------------------------------------------------
# Wrapper
# ---------------------------------------------------------------------------
def _round_up(n, m):
    return ((n + m - 1) // m) * m


def _choose_tile_b(batch, d, h1=128, h2=64,
                   vmem_budget_bytes=24 << 20, max_tile_b=8192):
    """Largest lane-aligned batch tile under a conservative VMEM estimate
    (safe for v7x's 64 MiB physical / 32 MiB scoped VMEM as well as v5e/v6e),
    while keeping >= 2 grid steps whenever the batch allows it."""
    # Estimated VMEM bytes per batch column:
    #   x block (f32, lane-padded to 128, double-buffered)   2 * ceil(d/128)*128*4
    #   h1 f32 + bf16 copy for layer 2                        128*4 + 128*2
    #   h2 f32                                                64*4
    #   output row (f32, double-buffered) + slack             ~72
    lane_d = _round_up(max(d, 1), 128)
    bytes_per_col = 2 * lane_d * 4 + h1 * 6 + h2 * 4 + 72
    tile = max_tile_b
    while tile > 128 and tile * bytes_per_col > vmem_budget_bytes:
        tile //= 2
    # Keep at least 2 grid steps (pipeline overlap; v7x shards the 'parallel'
    # batch axis across its two TensorCores).
    if batch > 128:
        tile = min(tile, _round_up(pl.cdiv(batch, 2), 128))
    return max(128, (tile // 128) * 128)


def ctr_forward(x, params, *, tile_b=None):
    """Fused CTR MLP forward.  x: (B, input_dim) f32; params in PyTorch layout
    (W: (out, in), b: (out,)).  Returns (B, 1) f32, matching the nn.Module."""
    w1, b1, w2, b2, w3, b3 = params
    B, D = x.shape
    H1, H2 = w1.shape[0], w2.shape[0]          # 128, 64

    if tile_b is None:
        tile_b = _choose_tile_b(B, D, H1, H2)
    grid = (pl.cdiv(B, tile_b),)               # ragged last block is fine: OOB input
                                               # rows only pollute their own lanes,
                                               # OOB output lanes are dropped.

    # Tiny one-time operand prep (no pre-pass over x at all).
    w1b = w1.astype(jnp.bfloat16)                           # (H1, D)
    w2b = w2.astype(jnp.bfloat16)                           # (H2, H1)
    b1c = b1.reshape(H1, 1).astype(jnp.float32)
    b2c = b2.reshape(H2, 1).astype(jnp.float32)
    w3c = w3.reshape(H2, 1).astype(jnp.float32)             # kept f32 for the VPU path
    b3c = b3.reshape(1, 1).astype(jnp.float32)

    flops = 2 * B * (D * H1 + H1 * H2 + H2)
    bytes_accessed = (x.size * 4 + w1b.size * 2 + w2b.size * 2
                      + (H1 + 2 * H2 + 1) * 4 + B * 4)
    cost = pl.CostEstimate(flops=flops, transcendentals=B,
                           bytes_accessed=bytes_accessed)

    out_row = pl.pallas_call(
        ctr_kernel,
        out_shape=jax.ShapeDtypeStruct((1, B), jnp.float32),
        grid_spec=pltpu.PrefetchScalarGridSpec(
            num_scalar_prefetch=0,
            grid=grid,
            in_specs=[
                # x tile: (tile_b, D) in native layout, marching down the batch.
                # Last dim == full array dim, so any D (e.g. 32) is legal — no K pad.
                pl.BlockSpec((tile_b, D), lambda i: (i, 0)),
                # weights / biases: full arrays, grid-invariant (resident).
                # (Optional: pipeline_mode=pl.Buffered(1) to drop their 2nd buffer.)
                pl.BlockSpec((H1, D), lambda i: (0, 0)),
                pl.BlockSpec((H1, 1), lambda i: (0, 0)),
                pl.BlockSpec((H2, H1), lambda i: (0, 0)),
                pl.BlockSpec((H2, 1), lambda i: (0, 0)),
                pl.BlockSpec((H2, 1), lambda i: (0, 0)),
                pl.BlockSpec((1, 1), lambda i: (0, 0)),
            ],
            # lane-dense output: one full-width (1, tile_b) row per grid step
            out_specs=pl.BlockSpec((1, tile_b), lambda i: (0, i)),
        ),
        compiler_params=pltpu.CompilerParams(
            dimension_semantics=("parallel",),
            # Explicit limit so large tiles don't trip the 16/32 MiB scoped-VMEM
            # defaults; well under v7x's 64 MiB physical VMEM.
            vmem_limit_bytes=48 * 1024 * 1024,
        ),
        cost_estimate=cost,
    )(x, w1b, b1c, w2b, b2c, w3c, b3c)

    # (1, B) -> (B, 1), matching the PyTorch module's output shape.
    return out_row.reshape(B, 1)


# ---------------------------------------------------------------------------
# Params / reference (PyTorch nn.Linear layout: W (out, in), b (out,))
# ---------------------------------------------------------------------------
def init_params(key, input_dim):
    k1, k2, k3, k4, k5, k6 = jax.random.split(key, 6)
    w1 = jax.random.normal(k1, (128, input_dim), jnp.float32) * 0.1
    b1 = jax.random.normal(k2, (128,), jnp.float32) * 0.01
    w2 = jax.random.normal(k3, (64, 128), jnp.float32) * 0.1
    b2 = jax.random.normal(k4, (64,), jnp.float32) * 0.01
    w3 = jax.random.normal(k5, (1, 64), jnp.float32) * 0.1
    b3 = jax.random.normal(k6, (1,), jnp.float32) * 0.01
    return (w1, b1, w2, b2, w3, b3)


def ctr_reference(x, params):
    w1, b1, w2, b2, w3, b3 = params
    h1 = jnp.maximum(x @ w1.T + b1, 0.0)
    h2 = jnp.maximum(h1 @ w2.T + b2, 0.0)
    return jax.nn.sigmoid(h2 @ w3.T + b3)


if __name__ == "__main__":
    key = jax.random.PRNGKey(0)
    kx, kp = jax.random.split(key)

    batch = 200        # not a multiple of the tile -> exercises the ragged last block
    input_dim = 32     # not a multiple of 128      -> exercises the no-K-pad path
    x = jax.random.normal(kx, (batch, input_dim), jnp.float32)
    params = init_params(kp, input_dim)

    fwd = jax.jit(ctr_forward)
    out = jax.block_until_ready(fwd(x, params))
    ref = ctr_reference(x, params)

    assert out.shape == (batch, 1)
    # bf16 weights/activations on the MXU vs f32 reference -> small drift allowed
    assert jnp.allclose(out, ref, atol=1e-2, rtol=1e-2), float(
        jnp.max(jnp.abs(out - ref)))

    print("KERNEL_OK")
</pallas_src>

<mosaic_0001>
module attributes {stable_mosaic.version = 11 : i64} {
  func.func @ctr_kernel(%arg0: i32, %arg1: memref<128x32xf32, #tpu.memory_space<vmem>>, %arg2: memref<128x32xbf16, #tpu.memory_space<vmem>>, %arg3: memref<128x1xf32, #tpu.memory_space<vmem>>, %arg4: memref<64x128xbf16, #tpu.memory_space<vmem>>, %arg5: memref<64x1xf32, #tpu.memory_space<vmem>>, %arg6: memref<64x1xf32, #tpu.memory_space<vmem>>, %arg7: memref<1x1xf32, #tpu.memory_space<vmem>>, %arg8: memref<1x128xf32, #tpu.memory_space<vmem>>) attributes {dimension_semantics = [#tpu.dimension_semantics<parallel>], iteration_bounds = array<i64: 2>, scalar_prefetch = 0 : i64, scratch_operands = 0 : i64, tpu.core_type = #tpu.core_type<tc>, window_params = [{transform_indices = @transform_0, window_bounds = array<i64: 128, 32>}, {pipeline_mode = #tpu.pipeline_mode<synchronous>, transform_indices = @transform_1, window_bounds = array<i64: 128, 32>}, {pipeline_mode = #tpu.pipeline_mode<synchronous>, transform_indices = @transform_2, window_bounds = array<i64: 128, 1>}, {pipeline_mode = #tpu.pipeline_mode<synchronous>, transform_indices = @transform_3, window_bounds = array<i64: 64, 128>}, {pipeline_mode = #tpu.pipeline_mode<synchronous>, transform_indices = @transform_4, window_bounds = array<i64: 64, 1>}, {pipeline_mode = #tpu.pipeline_mode<synchronous>, transform_indices = @transform_5, window_bounds = array<i64: 64, 1>}, {pipeline_mode = #tpu.pipeline_mode<synchronous>, transform_indices = @transform_6, window_bounds = array<i64: 1, 1>}, {transform_indices = @transform_7, window_bounds = array<i64: 1, 128>}]} {
    %c0 = arith.constant 0 : index
    %c0_0 = arith.constant 0 : index
    %0 = vector.load %arg1[%c0, %c0_0] : memref<128x32xf32, #tpu.memory_space<vmem>>, vector<128x32xf32>
    %1 = arith.truncf %0 : vector<128x32xf32> to vector<128x32xbf16>
    %c0_1 = arith.constant 0 : index
    %c0_2 = arith.constant 0 : index
    %2 = vector.load %arg2[%c0_1, %c0_2] : memref<128x32xbf16, #tpu.memory_space<vmem>>, vector<128x32xbf16>
    %cst = arith.constant dense<0.000000e+00> : vector<128x128xf32>
    %3 = tpu.matmul %2, %1, %cst {dimension_numbers = #tpu.dot_dimension_numbers<[1], [1], [0], [0], [0, 0, 1, 0], [], []>} : vector<128x32xbf16>, vector<128x32xbf16>, vector<128x128xf32> -> vector<128x128xf32>
    %c0_3 = arith.constant 0 : index
    %c0_4 = arith.constant 0 : index
    %4 = vector.load %arg3[%c0_3, %c0_4] : memref<128x1xf32, #tpu.memory_space<vmem>>, vector<128x1xf32>
    %5 = vector.broadcast %4 : vector<128x1xf32> to vector<128x128xf32>
    %6 = arith.addf %3, %5 : vector<128x128xf32>
    %cst_5 = arith.constant 0.000000e+00 : f32
    %7 = vector.broadcast %cst_5 : f32 to vector<128x128xf32>
    %8 = arith.maximumf %6, %7 : vector<128x128xf32>
    %c0_6 = arith.constant 0 : index
    %c0_7 = arith.constant 0 : index
    %9 = vector.load %arg4[%c0_6, %c0_7] : memref<64x128xbf16, #tpu.memory_space<vmem>>, vector<64x128xbf16>
    %10 = arith.truncf %8 : vector<128x128xf32> to vector<128x128xbf16>
    %cst_8 = arith.constant dense<0.000000e+00> : vector<64x128xf32>
    %11 = tpu.matmul %9, %10, %cst_8 {dimension_numbers = #tpu.dot_dimension_numbers<[1], [0], [0], [1], [0, 0, 1, 1], [], []>} : vector<64x128xbf16>, vector<128x128xbf16>, vector<64x128xf32> -> vector<64x128xf32>
    %c0_9 = arith.constant 0 : index
    %c0_10 = arith.constant 0 : index
    %12 = vector.load %arg5[%c0_9, %c0_10] : memref<64x1xf32, #tpu.memory_space<vmem>>, vector<64x1xf32>
    %13 = vector.broadcast %12 : vector<64x1xf32> to vector<64x128xf32>
    %14 = arith.addf %11, %13 : vector<64x128xf32>
    %cst_11 = arith.constant 0.000000e+00 : f32
    %15 = vector.broadcast %cst_11 : f32 to vector<64x128xf32>
    %16 = arith.maximumf %14, %15 : vector<64x128xf32>
    %c0_12 = arith.constant 0 : index
    %c0_13 = arith.constant 0 : index
    %17 = vector.load %arg6[%c0_12, %c0_13] : memref<64x1xf32, #tpu.memory_space<vmem>>, vector<64x1xf32>
    %18 = vector.broadcast %17 : vector<64x1xf32> to vector<64x128xf32>
    %19 = arith.mulf %16, %18 : vector<64x128xf32>
    %cst_14 = arith.constant dense<0.000000e+00> : vector<128xf32>
    %20 = vector.multi_reduction <add>, %19, %cst_14 [0] : vector<64x128xf32> to vector<128xf32>
    %21 = vector.shape_cast %20 : vector<128xf32> to vector<1x128xf32>
    %c0_15 = arith.constant 0 : index
    %c0_16 = arith.constant 0 : index
    %22 = vector.load %arg7[%c0_15, %c0_16] : memref<1x1xf32, #tpu.memory_space<vmem>>, vector<1x1xf32>
    %23 = vector.broadcast %22 : vector<1x1xf32> to vector<1x128xf32>
    %24 = arith.addf %21, %23 : vector<1x128xf32>
    %cst_17 = arith.constant 0.000000e+00 : f32
    %25 = vector.broadcast %cst_17 : f32 to vector<1x128xf32>
    %26 = arith.subf %25, %24 : vector<1x128xf32>
    %27 = math.exp %26 : vector<1x128xf32>
    %cst_18 = arith.constant 1.000000e+00 : f32
    %28 = vector.broadcast %cst_18 : f32 to vector<1x128xf32>
    %29 = arith.addf %28, %27 : vector<1x128xf32>
    %30 = tpu.reciprocal %29 {approx = true} : vector<1x128xf32> -> vector<1x128xf32>
    %c0_19 = arith.constant 0 : index
    %c0_20 = arith.constant 0 : index
    %31 = vector.load %arg8[%c0_19, %c0_20] : memref<1x128xf32, #tpu.memory_space<vmem>>, vector<1x128xf32>
    tpu.vector_store %arg8[%c0_19, %c0_20], %30 {strides = array<i32>} : memref<1x128xf32, #tpu.memory_space<vmem>>, vector<1x128xf32>,
    return
  }
  func.func @transform_0(%arg0: i32) -> (i32, i32) {
    %c0_i32 = arith.constant 0 : i32
    %c0_i32_0 = arith.constant 0 : i32
    return %arg0, %c0_i32 : i32, i32
  }
  func.func @transform_1(%arg0: i32) -> (i32, i32) {
    %c0_i32 = arith.constant 0 : i32
    %c0_i32_0 = arith.constant 0 : i32
    %c0_i32_1 = arith.constant 0 : i32
    return %c0_i32, %c0_i32_0 : i32, i32
  }
  func.func @transform_2(%arg0: i32) -> (i32, i32) {
    %c0_i32 = arith.constant 0 : i32
    %c0_i32_0 = arith.constant 0 : i32
    %c0_i32_1 = arith.constant 0 : i32
    return %c0_i32, %c0_i32_0 : i32, i32
  }
  func.func @transform_3(%arg0: i32) -> (i32, i32) {
    %c0_i32 = arith.constant 0 : i32
    %c0_i32_0 = arith.constant 0 : i32
    %c0_i32_1 = arith.constant 0 : i32
    return %c0_i32, %c0_i32_0 : i32, i32
  }
  func.func @transform_4(%arg0: i32) -> (i32, i32) {
    %c0_i32 = arith.constant 0 : i32
    %c0_i32_0 = arith.constant 0 : i32
    %c0_i32_1 = arith.constant 0 : i32
    return %c0_i32, %c0_i32_0 : i32, i32
  }
  func.func @transform_5(%arg0: i32) -> (i32, i32) {
    %c0_i32 = arith.constant 0 : i32
    %c0_i32_0 = arith.constant 0 : i32
    %c0_i32_1 = arith.constant 0 : i32
    return %c0_i32, %c0_i32_0 : i32, i32
  }
  func.func @transform_6(%arg0: i32) -> (i32, i32) {
    %c0_i32 = arith.constant 0 : i32
    %c0_i32_0 = arith.constant 0 : i32
    %c0_i32_1 = arith.constant 0 : i32
    return %c0_i32, %c0_i32_0 : i32, i32
  }
  func.func @transform_7(%arg0: i32) -> (i32, i32) {
    %c0_i32 = arith.constant 0 : i32
    %c0_i32_0 = arith.constant 0 : i32
    return %c0_i32, %arg0 : i32, i32
  }
}

</mosaic_0001>

<bundles_post_ra>
// kernel: ctr_forward.1
= control target key start
LH: loop header
LB: loop body
LE: loop exit
PB: predicated region body
PF: predicated region fallthrough
CT: control target
= control target key end

     0   :  { %s1515_s0 = inlined_call_operand.vmem [shape: f32[200,32], index: 0, kind: input, shape index: {}]   ;;  %s1516_s1 = inlined_call_operand.vmem [shape: bf16[128,32], index: 1, kind: input, shape index: {}]   ;;  %s1517_s2 = inlined_call_operand.vmem [shape: f32[128,1], index: 2, kind: input, shape index: {}]   ;;  %s1518_s3 = inlined_call_operand.vmem [shape: bf16[64,128], index: 3, kind: input, shape index: {}]   ;;  %s1519_s4 = inlined_call_operand.vmem [shape: f32[64,1], index: 4, kind: input, shape index: {}]   ;;  %s1520_s5 = inlined_call_operand.vmem [shape: f32[64,1], index: 5, kind: input, shape index: {}]   ;;  %s1521_s6 = inlined_call_operand.<no memory space> [shape: f32[1,1], index: 6, kind: input, shape index: {}]   ;;  %s1522_s7 = inlined_call_operand.hbm [shape: f32[1,200], index: 7, kind: output, shape index: {}]  }
   0x1   :  { %v12_v0 = vstv %s1521_s6 }
   0x2   :  { %13 = vst [vmem:[#allocation2] sm:$0x1] %v12_v0 }
   0x3   :  { %14 = vsyncpa [#allocation4], 0 }
   0x4   :  { %16 = vsyncpa [#allocation4 + $0x1], 0  ;;  %s1240_s26 = smov 0   ;;  %s1242_s27 = smov 0  }
   0x5   :  { %s1244_s28 = smov 0   ;;  %s1246_s29 = smov 0  }
   0x6 LB: > { %s953_s6 = sadd.s32 4294967295, %s1193_s29   ;;  %s954_s30 = sadd.s32 4294967294, %s1193_s29   ;;  %s1193_s29 = sphi %s1246_s29, %s1528_s29   ;;  %s1189_s28 = sphi %s1244_s28, %s1527_s28   ;;  %s1185_s27 = sphi %s1242_s27, %s1526_s27   ;;  %s1181_s26 = sphi %s1240_s26, %s1525_s26  }
   0x7   : > { %s1263_s8 = sadd.s32 1, %s1193_s29   ;;  %s181_s9 = sadd.s32 1, %s1189_s28 }
   0x8   : > { %s178_s10 = ssub.s32 %s1193_s29, %s1263_s8  ;;  %p191_p0 = scmp.ne.s32.totalorder %s1189_s28, %s1185_s27 }
   0x9   : > { %p179_p1 = scmp.eq.s32.totalorder %s178_s10, 0  ;;  %p192_p2 = scmp.eq.s32.totalorder %s953_s6, 1 }
   0xa   : > { %p197_p3 = scmp.ne.s32.totalorder %s1185_s27, %s1181_s26  ;;  %p198_p4 = scmp.eq.s32.totalorder %s954_s30, 1 }
   0xb   : > { %s1273_s11 = scalar_select %p179_p1, %s1189_s28, %s181_s9  }
   0xc   : > { %p1275_p5 = por %p192_p2, %p191_p0  ;;  %p1279_p6 = por %p198_p4, %p197_p3 }
   0xd   : > { %p957_p7 = scmp.ge.s32.totalorder %s1193_s29, 1  ;;  %p251_p8 = scmp.lt.s32.totalorder %s1193_s29, 3 }
   0xf   : > { %p252_p9 = pnand %p957_p7, %p251_p8 }
  0x10   : > { %s1285_s14 = sshll.u32 (!%p252_p9), %s953_s6, 4  ;;  %s284_s20 = sand.u32 (!%p252_p9), 1, %s1185_s27  }
  0x11   : > { %255 = sbr.rel (%p252_p9) target bundleno = 632 (0x278), region = 48  ;;  %p291_p10 = scmp.lt.s32.totalorder (!%p252_p9), %s1285_s14, 24 }
  0x12   : > { %s285_s22 = scalar_lea.vmem (!%p252_p9), [#allocation3], %s284_s20  ;;  %s1480_s6 = scalar_lea.hbm (!%p252_p9), %s1522_s7, %s1285_s14 }
  0x13   : > { %s899_s23 = sshll.u32 (!%p252_p9), %s285_s22, 4  ;;  %s887_s30 = scalar_lea.sflag (!%p252_p9), [#allocation4], %s284_s20  ;;  %s900_s23 = int_to_ptr.vmem [resolvable:$true] %s899_s23 }
  0x14   : > { %s1133_s9 = scalar_lea.vmem (!%p252_p9), %s900_s23, 16  ;;  %s1196_s10 = smov (!%p252_p9), [#allocation3]  }
  0x15   : > { %p1134_p11 = scmp.ne.s32.totalorder (!%p252_p9), %s900_s23, %s1133_s9 }
  0x16   : > { %v1117_v1 = vld [vmem:[%s1516_s1] sm:$0xff]   ;;  %vm477_vm0 = vcmask 261120   ;;  %s292_s17 = scalar_select %p291_p10, %s1285_s14, 24  ;;  %v1195_v2 = vmov 0   ;;  %v355_v12 = vld [vmem:[%s1517_s2 + $0x70] sm:$0xff]  ;;  %v356_v14 = vld [vmem:[%s1517_s2 + $0x78] sm:$0xff] }
  0x17   : > { %1027 = vmatprep.mubr.msk.bf16.mxu0 %vm477_vm0, %v1117_v1  ;;  %1115 = vset.pattern.permute.xlu0 %v1195_v2  ;;  %v353_v13 = vld [vmem:[%s1517_s2 + $0x60] sm:$0xff]  ;;  %v354_v17 = vld [vmem:[%s1517_s2 + $0x68] sm:$0xff]  ;;  %v351_v18 = vld [vmem:[%s1517_s2 + $0x50] sm:$0xff]  ;;  %p1135_p12 = pnand %p1134_p11, %p1275_p5 }
  0x18   : > { %1116 = vset.pattern.permute.xlu1 %v1195_v2  ;;  %s959_s18 = sshll.u32 %s292_s17, 3  ;;  %429 = vperm.xlu0 %1115, %v355_v12   ;;  %v352_v19 = vld [vmem:[%s1517_s2 + $0x58] sm:$0xff]  ;;  %v349_v22 = vld [vmem:[%s1517_s2 + $0x40] sm:$0xff]  ;;  %v350_v25 = vld [vmem:[%s1517_s2 + $0x48] sm:$0xff] }
  0x19   : > { %s1296_s21 = scalar_lea.vmem %s1515_s0, %s959_s18  ;;  %419 = vperm.xlu1 %1116, %v353_v13   ;;  %v347_v26 = vld [vmem:[%s1517_s2 + $0x30] sm:$0xff]  ;;  %v348_v27 = vld [vmem:[%s1517_s2 + $0x38] sm:$0xff]  ;;  %v345_v30 = vld [vmem:[%s1517_s2 + $0x20] sm:$0xff]  ;;  %p1136_p13 = pneg %p1135_p12 }
  0x1a   : > { %v315_v3 = vld [vmem:[%s1296_s21 + $0x70] sm:$0xff]  ;;  %v316_v4 = vld [vmem:[%s1296_s21 + $0x78] sm:$0xff]  ;;  %v313_v5 = vld [vmem:[%s1296_s21 + $0x60] sm:$0xff] }
  0x1b   : > { %v324_v6 = vpack.c.bf16 %v316_v4, %v315_v3  ;;  %v314_v7 = vld [vmem:[%s1296_s21 + $0x68] sm:$0xff]  ;;  %v311_v10 = vld [vmem:[%s1296_s21 + $0x50] sm:$0xff]  ;;  %v312_v11 = vld [vmem:[%s1296_s21 + $0x58] sm:$0xff] }
  0x1c   : > { %v323_v8 = vpack.c.bf16 %v314_v7, %v313_v5  ;;  %v322_v16 = vpack.c.bf16 %v312_v11, %v311_v10  ;;  %434 = vperm.xlu0 %1115, %v356_v14   ;;  %v309_v20 = vld [vmem:[%s1296_s21 + $0x40] sm:$0xff]  ;;  %v310_v21 = vld [vmem:[%s1296_s21 + $0x48] sm:$0xff]  ;;  %v307_v28 = vld [vmem:[%s1296_s21 + $0x30] sm:$0xff] }
  0x1d   : > { %1067 = vmatprep.subr.msk.bf16.mxu0 %vm477_vm0, %v324_v6  ;;  %v524_v9 = vsel %vm477_vm0, %v324_v6, 0  ;;  %424 = vperm.xlu1 %1116, %v354_v17   ;;  %v321_v24 = vpack.c.bf16 %v310_v21, %v309_v20  ;;  %v308_v29 = vld [vmem:[%s1296_s21 + $0x38] sm:$0xff]  ;;  %v346_v33 = vld [vmem:[%s1517_s2 + $0x28] sm:$0xff]  ;;  %v343_v34 = vld [vmem:[%s1517_s2 + $0x10] sm:$0xff] }
  0x1e   : > { %1012 = vmatpush3.bf16.xpose.msra.mxu0 %v524_v9  ;;  %v521_v15 = vsel %vm477_vm0, %v323_v8, 0  ;;  %v518_v23 = vsel %vm477_vm0, %v322_v16, 0  ;;  %v320_v32 = vpack.c.bf16 %v308_v29, %v307_v28  ;;  %v344_v35 = vld [vmem:[%s1517_s2 + $0x18] sm:$0xff]  ;;  %v305_v36 = vld [vmem:[%s1296_s21 + $0x20] sm:$0xff]  ;;  %v306_v37 = vld [vmem:[%s1296_s21 + $0x28] sm:$0xff] }
  0x1f   : > { %1068 = vmatprep.subr.msk.bf16.mxu0 %vm477_vm0, %v323_v8  ;;  %v515_v31 = vsel %vm477_vm0, %v321_v24, 0  ;;  %v341_v38 = vld [vmem:[%s1517_s2] sm:$0xff]  ;;  %v319_v40 = vpack.c.bf16 %v306_v37, %v305_v36  ;;  %v342_v41 = vld [vmem:[%s1517_s2 + $0x8] sm:$0xff]  ;;  %v303_v44 = vld [vmem:[%s1296_s21 + $0x10] sm:$0xff] }
  0x20   : > { %409 = vperm.xlu0 %1115, %v351_v18   ;;  %v512_v39 = vsel %vm477_vm0, %v320_v32, 0  ;;  %v655_v42 = vld [vmem:[%s1519_s4] sm:$0xff]  ;;  %v656_v43 = vld [vmem:[%s1519_s4 + $0x8] sm:$0xff]  ;;  %v304_v45 = vld [vmem:[%s1296_s21 + $0x18] sm:$0xff] }
  0x21   : > { %414 = vperm.xlu1 %1116, %v352_v19   ;;  %v657_v46 = vld [vmem:[%s1519_s4 + $0x10] sm:$0xff]  ;;  %v509_v47 = vsel %vm477_vm0, %v319_v40, 0  ;;  %v318_v48 = vpack.c.bf16 %v304_v45, %v303_v44  ;;  %v658_v49 = vld [vmem:[%s1519_s4 + $0x18] sm:$0xff]  ;;  %v800_v50 = vld [vmem:[%s1520_s5] sm:$0xff] }
  0x22   : > { %v801_v51 = vld [vmem:[%s1520_s5 + $0x8] sm:$0xff]  ;;  %v301_v52 = vld [vmem:[%s1296_s21] sm:$0xff]  ;;  %v802_v57 = vld [vmem:[%s1520_s5 + $0x10] sm:$0xff] }
  0x23   : > { %v302_v53 = vld [vmem:[%s1296_s21 + $0x8] sm:$0xff]  ;;  %v659_v54 = vld [vmem:[%s1519_s4 + $0x20] sm:$0xff]  ;;  %v506_v55 = vsel %vm477_vm0, %v318_v48, 0  ;;  %v803_v59 = vld [vmem:[%s1520_s5 + $0x18] sm:$0xff]  ;;  %s1137_s21 = sshll.u32 %s1196_s10, 4  ;;  %s1138_s21 = int_to_ptr.vmem [resolvable:$false] %s1137_s21 }
  0x24   : > { %399 = vperm.xlu0 %1115, %v349_v22   ;;  %v317_v56 = vpack.c.bf16 %v302_v53, %v301_v52  ;;  %v660_v58 = vld [vmem:[%s1519_s4 + $0x28] sm:$0xff]  ;;  %v661_v60 = vld [vmem:[%s1519_s4 + $0x30] sm:$0xff]  ;;  %v804_v62 = vld [vmem:[%s1520_s5 + $0x20] sm:$0xff]  ;;  %s1139_s15 = scalar_lea.vmem %s1138_s21, 32  ;;  %p1140_p0 = scmp.lt.s32.totalorder %s900_s23, %s1138_s21 }
  0x25   : > { %404 = vperm.xlu1 %1116, %v350_v25   ;;  %v662_v63 = vld [vmem:[%s1519_s4 + $0x38] sm:$0xff]  ;;  %v805_v0 = vld [vmem:[%s1520_s5 + $0x28] sm:$0xff]  ;;  %v1119_v2 = vld [vmem:[%s1516_s1 + $0x10] sm:$0xff]   ;;  %p1141_p1 = scmp.lt.s32.totalorder %s1139_s15, %s1133_s9 }
  0x26   : > { %1014 = vmatpush3.bf16.xpose.msra.mxu0 %v521_v15  ;;  %v503_v61 = vsel %vm477_vm0, %v317_v56, 0  ;;  %v1118_v1 = vld [vmem:[%s1516_s1 + $0x8] sm:$0xff]   ;;  %v806_v3 = vld [vmem:[%s1520_s5 + $0x30] sm:$0xff]  ;;  %v807_v4 = vld [vmem:[%s1520_s5 + $0x38] sm:$0xff] }
  0x27   : > { %1069 = vmatprep.subr.msk.bf16.mxu0 %vm477_vm0, %v322_v16  ;;  %v869_v5 = vld [vmem:[#allocation2] sm:$0x1]  ;;  %v1120_v6 = vld [vmem:[%s1516_s1 + $0x18] sm:$0xff]   ;;  %v1122_v8 = vld [vmem:[%s1516_s1 + $0x28] sm:$0xff]   ;;  %p1142_p2 = por %p1141_p1, %p1140_p0 }
  0x28   : > { %389 = vperm.xlu0 %1115, %v347_v26   ;;  %v1121_v7 = vld [vmem:[%s1516_s1 + $0x20] sm:$0xff]   ;;  %v1123_v9 = vld [vmem:[%s1516_s1 + $0x30] sm:$0xff]   ;;  %v1124_v10 = vld [vmem:[%s1516_s1 + $0x38] sm:$0xff]  }
  0x29   : > { %394 = vperm.xlu1 %1116, %v348_v27   ;;  %v1125_v11 = vld [vmem:[%s1518_s3] sm:$0xff]   ;;  %p1143_p3 = pnand %p1142_p2, %p1136_p13 }
  0x2a   : > { %1059 = vmatprep.mubr.bf16.mxu1 %v1125_v11 }
  0x2c   : > { %379 = vperm.xlu0 %1115, %v345_v30  }
  0x2d   : > { %384 = vperm.xlu1 %1116, %v346_v33  }
  0x2e   : > { %1016 = vmatpush3.bf16.xpose.msra.mxu0 %v518_v23 }
  0x2f   : > { %1070 = vmatprep.subr.msk.bf16.mxu0 %vm477_vm0, %v321_v24 }
  0x30   : > { %369 = vperm.xlu0 %1115, %v343_v34  }
  0x31   : > { %374 = vperm.xlu1 %1116, %v344_v35  }
  0x34   : > { %359 = vperm.xlu0 %1115, %v341_v38  }
  0x35   : > { %364 = vperm.xlu1 %1116, %v342_v41  }
  0x36   : > { %1018 = vmatpush3.bf16.xpose.msra.mxu0 %v515_v31 }
  0x37   : > { %1071 = vmatprep.subr.msk.bf16.mxu0 %vm477_vm0, %v320_v32 }
  0x38   : > { %665 = vperm.xlu0 %1115, %v655_v42  }
  0x39   : > { %670 = vperm.xlu1 %1116, %v656_v43  }
  0x3c   : > { %675 = vperm.xlu0 %1115, %v657_v46  }
  0x3d   : > { %680 = vperm.xlu1 %1116, %v658_v49  }
  0x3e   : > { %1020 = vmatpush3.bf16.xpose.msra.mxu0 %v512_v39 }
  0x3f   : > { %1072 = vmatprep.subr.msk.bf16.mxu0 %vm477_vm0, %v319_v40 }
  0x40   : > { %810 = vperm.xlu0 %1115, %v800_v50  }
  0x41   : > { %815 = vperm.xlu1 %1116, %v801_v51  }
  0x44   : > { %685 = vperm.xlu0 %1115, %v659_v54  }
  0x45   : > { %820 = vperm.xlu1 %1116, %v802_v57  }
  0x46   : > { %1022 = vmatpush3.bf16.xpose.msra.mxu0 %v509_v47 }
  0x47   : > { %1073 = vmatprep.subr.msk.bf16.mxu0 %vm477_vm0, %v318_v48 }
  0x48   : > { %690 = vperm.xlu0 %1115, %v660_v58  }
  0x49   : > { %825 = vperm.xlu1 %1116, %v803_v59  }
  0x4c   : > { %695 = vperm.xlu0 %1115, %v661_v60  }
  0x4d   : > { %830 = vperm.xlu1 %1116, %v804_v62  }
  0x4e   : > { %1024 = vmatpush3.bf16.xpose.msra.mxu0 %v506_v55 }
  0x4f   : > { %1074 = vmatprep.subr.msk.bf16.mxu0 %vm477_vm0, %v317_v56 }
  0x50   : > { %700 = vperm.xlu0 %1115, %v662_v63  }
  0x51   : > { %835 = vperm.xlu1 %1116, %v805_v0  }
  0x54   : > { %840 = vperm.xlu0 %1115, %v806_v3  }
  0x55   : > { %845 = vperm.xlu1 %1116, %v807_v4  }
  0x56   : > { %1026 = vmatpush3.bf16.xpose.msra.mxu0 %v503_v61 }
  0x58   : > { %872 = vperm.xlu0 %1115, %v869_v5  }
  0x5d   : > { %1028 = vmatmul.mubr.msk.bf16.vlgmr.msra.gmra.mxu0 %vm477_vm0, %v1118_v1 }
  0x5e   : > { %1031 = vmatprep.mubr.msk.bf16.mxu0 %vm477_vm0, %v1119_v2 }
  0x65   : > { %1032 = vmatmul.mubr.msk.bf16.gmra.mxu0 %vm477_vm0, %v1120_v6 }
  0x66   : > { %1035 = vmatprep.mubr.msk.bf16.mxu0 %vm477_vm0, %v1121_v7 }
  0x6d   : > { %1036 = vmatmul.mubr.msk.bf16.gmra.mxu0 %vm477_vm0, %v1122_v8 }
  0x6e   : > { %1039 = vmatprep.mubr.msk.bf16.mxu0 %vm477_vm0, %v1123_v9 }
  0x75   : > { %1040 = vmatmul.mubr.msk.bf16.gmra.mxu0 %vm477_vm0, %v1124_v10 }
  0x93   : > { %v430_v18 = vpop.permute.xlu0 %429 }
  0x94   : > { %v420_v16 = vpop.permute.xlu1 %419 }
  0x97   : > { %v435_v23 = vpop.permute.xlu0 %434 }
  0x98   : > { %v425_v21 = vpop.permute.xlu1 %424 }
  0x9b   : > { %v410_v28 = vpop.permute.xlu0 %409 }
  0x9c   : > { %v415_v26 = vpop.permute.xlu1 %414 }
  0x9f   : > { %v400_v34 = vpop.permute.xlu0 %399 }
  0xa0   : > { %v405_v31 = vpop.permute.xlu1 %404 }
  0xa3   : > { %v390_v48 = vpop.permute.xlu0 %389 }
  0xa4   : > { %v395_v43 = vpop.permute.xlu1 %394 }
  0xa7   : > { %v380_v58 = vpop.permute.xlu0 %379 }
  0xa8   : > { %v385_v54 = vpop.permute.xlu1 %384 }
  0xab   : > { %v370_v3 = vpop.permute.xlu0 %369 }
  0xac   : > { %v375_v0 = vpop.permute.xlu1 %374 }
  0xb0   : > { %v365_v9 = vpop.permute.xlu1 %364 }
 0x11d   : > { %v1457_v12 = vpop.f32.mrf.mxu0 }
 0x11e   : > { %v569_v7 = vadd.f32 %v1457_v12, %v370_v3  ;;  %v1126_v12 = vld [vmem:[%s1518_s3 + $0x8] sm:$0xff]  }
 0x11f   : > { %v1459_v13 = vpop.f32.mrf.mxu0 }
 0x121   : > { %v1030_v14 = vpop.f32.mrf.mxu0 }
 0x122   : > { %v572_v4 = vadd.f32 %v1030_v14, %v375_v0 }
 0x123   : > { %v1461_v15 = vpop.f32.mrf.mxu0 }
 0x124   : > { %v626_v10 = vmax.f32 %v572_v4, 0.0  ;;  %v564_v11 = vadd.f32 %v1461_v15, %v365_v9  ;;  %v1127_v15 = vld [vmem:[%s1518_s3 + $0x10] sm:$0xff]  }
 0x125   : > { %v1033_v17 = vpop.f32.mrf.mxu0 }
 0x126   : > { %v585_v59 = vadd.f32 %v1033_v17, %v390_v48  ;;  %v360_v17 = vpop.permute.xlu0 %359  ;;  %v624_v14 = vmax.f32 %v564_v11, 0.0 }
 0x127   : > { %v576_v19 = vpop.f32.mrf.mxu0 }
 0x128   : > { %v629_v1 = vmax.f32 %v585_v59, 0.0  ;;  %v577_v2 = vadd.f32 %v576_v19, %v380_v58  ;;  %v561_v19 = vadd.f32 %v1459_v13, %v360_v17  ;;  %v1128_v13 = vld [vmem:[%s1518_s3 + $0x18] sm:$0xff]   ;;  %v875_v17 = vlaneseq }
 0x129   : > { %v1034_v20 = vpop.f32.mrf.mxu0 }
 0x12a   : > { %v588_v55 = vadd.f32 %v1034_v20, %v395_v43  ;;  %v627_v8 = vmax.f32 %v577_v2, 0.0 }
 0x12b   : > { %v579_v22 = vpop.f32.mrf.mxu0 }
 0x12c   : > { %v630_v61 = vmax.f32 %v588_v55, 0.0  ;;  %v580_v62 = vadd.f32 %v579_v22, %v385_v54 }
 0x12d   : > { %v1037_v24 = vpop.f32.mrf.mxu0 }
 0x12e   : > { %v601_v44 = vadd.f32 %v1037_v24, %v410_v28  ;;  %v650_v5 = vpack.c.bf16 %v630_v61, %v629_v1  ;;  %v628_v6 = vmax.f32 %v580_v62, 0.0  ;;  %v671_v24 = vpop.permute.xlu1 %670 }
 0x12f   : > { %v592_v25 = vpop.f32.mrf.mxu0 }
 0x130   : > { %v633_v52 = vmax.f32 %v601_v44, 0.0  ;;  %v593_v53 = vadd.f32 %v592_v25, %v400_v34 }
 0x131   : > { %v1038_v27 = vpop.f32.mrf.mxu0 }
 0x132   : > { %v604_v39 = vadd.f32 %v1038_v27, %v415_v26  ;;  %v631_v60 = vmax.f32 %v593_v53, 0.0  ;;  %v681_v26 = vpop.permute.xlu1 %680 }
 0x133   : > { %v595_v29 = vpop.f32.mrf.mxu0 }
 0x134   : > { %v634_v49 = vmax.f32 %v604_v39, 0.0  ;;  %v596_v50 = vadd.f32 %v595_v29, %v405_v31 }
 0x135   : > { %v1041_v30 = vpop.f32.mrf.mxu0 }
 0x136   : > { %v617_v33 = vadd.f32 %v1041_v30, %v430_v18  ;;  %v652_v56 = vpack.c.bf16 %v634_v49, %v633_v52  ;;  %v632_v57 = vmax.f32 %v596_v50, 0.0  ;;  %v625_v18 = vmax.f32 %v569_v7, 0.0  ;;  %v816_v28 = vpop.permute.xlu1 %815 }
 0x137   : > { %v608_v32 = vpop.f32.mrf.mxu0 }
 0x138   : > { %v609_v36 = vadd.f32 %v608_v32, %v420_v16  ;;  %v637_v40 = vmax.f32 %v617_v33, 0.0  ;;  %v651_v63 = vpack.c.bf16 %v632_v57, %v631_v60  ;;  %v649_v16 = vpack.c.bf16 %v628_v6, %v627_v8 }
 0x139   : > { %v1042_v35 = vpop.f32.mrf.mxu0  ;;  %v648_v20 = vpack.c.bf16 %v626_v10, %v625_v18 }
 0x13a   : > { %v620_v37 = vadd.f32 %v1042_v35, %v435_v23  ;;  %v635_v45 = vmax.f32 %v609_v36, 0.0  ;;  %v666_v23 = vpop.permute.xlu0 %665  ;;  %v821_v30 = vpop.permute.xlu1 %820 }
 0x13b   : > { %v611_v38 = vpop.f32.mrf.mxu0 }
 0x13c   : > { %v638_v41 = vmax.f32 %v620_v37, 0.0  ;;  %v612_v42 = vadd.f32 %v611_v38, %v425_v21  ;;  %v623_v21 = vmax.f32 %v561_v19, 0.0 }
 0x13e   : > { %v636_v46 = vmax.f32 %v612_v42, 0.0  ;;  %v654_v47 = vpack.c.bf16 %v638_v41, %v637_v40  ;;  %v647_v22 = vpack.c.bf16 %v624_v14, %v623_v21  ;;  %v676_v25 = vpop.permute.xlu0 %675  ;;  %v826_v35 = vpop.permute.xlu1 %825 }
 0x140   : > { %v653_v51 = vpack.c.bf16 %v636_v46, %v635_v45  ;;  %1043 = vmatprep.subr.bf16.mxu1 %v654_v47 }
 0x141   : > { %1044 = vmatpush3.bf16.msra.mxu1 %v654_v47 }
 0x142   : > { %1045 = vmatprep.subr.bf16.mxu1 %v653_v51  ;;  %v811_v27 = vpop.permute.xlu0 %810  ;;  %v831_v46 = vpop.permute.xlu1 %830 }
 0x145   : > { %1046 = vmatpush3.bf16.msra.mxu1 %v653_v51 }
 0x146   : > { %1047 = vmatprep.subr.bf16.mxu1 %v652_v56  ;;  %v686_v29 = vpop.permute.xlu0 %685 }
 0x149   : > { %1048 = vmatpush3.bf16.msra.mxu1 %v652_v56 }
 0x14a   : > { %1049 = vmatprep.subr.bf16.mxu1 %v651_v63  ;;  %v691_v32 = vpop.permute.xlu0 %690 }
 0x14d   : > { %1050 = vmatpush3.bf16.msra.mxu1 %v651_v63  ;;  %v836_v63 = vpop.permute.xlu1 %835 }
 0x14e   : > { %1051 = vmatprep.subr.bf16.mxu1 %v650_v5  ;;  %v696_v42 = vpop.permute.xlu0 %695 }
 0x151   : > { %1052 = vmatpush3.bf16.msra.mxu1 %v650_v5  ;;  %v846_v10 = vpop.permute.xlu1 %845 }
 0x152   : > { %1053 = vmatprep.subr.bf16.mxu1 %v649_v16  ;;  %v701_v57 = vpop.permute.xlu0 %700 }
 0x155   : > { %1054 = vmatpush3.bf16.msra.mxu1 %v649_v16 }
 0x156   : > { %1055 = vmatprep.subr.bf16.mxu1 %v648_v20  ;;  %v841_v7 = vpop.permute.xlu0 %840 }
 0x159   : > { %1056 = vmatpush3.bf16.msra.mxu1 %v648_v20  ;;  %v876_v20 = vshrl.u32 %v875_v17, 7 }
 0x15a   : > { %1057 = vmatprep.subr.bf16.mxu1 %v647_v22 }
 0x15d   : > { %1058 = vmatpush3.bf16.msra.mxu1 %v647_v22  ;;  %v877_v22 = vsub.s32 0, %v876_v20 }
 0x160   : > { %1060 = vmatmul.mubr.bf16.vlgmr.msra.gmra.mxu1 %v1126_v12 }
 0x161   : > { %1063 = vmatprep.mubr.bf16.mxu1 %v1127_v15  ;;  %v873_v15 = vpop.permute.xlu0 %872 }
 0x168   : > { %1064 = vmatmul.mubr.bf16.gmra.mxu1 %v1128_v13 }
 0x220   : > { %v1061_v31 = vpop.f32.mrf.mxu1 }
 0x221   : > { %v770_v37 = vadd.f32 %v1061_v31, %v676_v25 }
 0x222   : > { %v761_v33 = vpop.f32.mrf.mxu1 }
 0x223   : > { %v762_v34 = vadd.f32 %v761_v33, %v666_v23  ;;  %v794_v44 = vmax.f32 %v770_v37, 0.0  ;;  %v878_v23 = vrot.slane %v873_v15, %v877_v22 }
 0x224   : > { %v1062_v36 = vpop.f32.mrf.mxu1 }
 0x225   : > { %v792_v39 = vmax.f32 %v762_v34, 0.0  ;;  %v773_v40 = vadd.f32 %v1062_v36, %v681_v26  ;;  %v850_v53 = vmul.f32 %v821_v30, %v794_v44 }
 0x226   : > { %v764_v38 = vpop.f32.mrf.mxu1 }
 0x227   : > { %v765_v41 = vadd.f32 %v764_v38, %v671_v24  ;;  %v848_v48 = vmul.f32 %v811_v27, %v792_v39  ;;  %v795_v49 = vmax.f32 %v773_v40, 0.0 }
 0x228   : > { %v1065_v43 = vpop.f32.mrf.mxu1 }
 0x229   : > { %v793_v45 = vmax.f32 %v765_v41, 0.0  ;;  %v786_v55 = vadd.f32 %v1065_v43, %v696_v42  ;;  %v851_v59 = vmul.f32 %v826_v35, %v795_v49 }
 0x22a   : > { %v777_v47 = vpop.f32.mrf.mxu1 }
 0x22b   : > { %v849_v50 = vmul.f32 %v816_v28, %v793_v45  ;;  %v778_v51 = vadd.f32 %v777_v47, %v686_v29  ;;  %v798_v0 = vmax.f32 %v786_v55, 0.0 }
 0x22c   : > { %v1066_v52 = vpop.f32.mrf.mxu1 }
 0x22d   : > { %v856_v54 = vadd.f32 %v849_v50, %v848_v48  ;;  %v796_v56 = vmax.f32 %v778_v51, 0.0  ;;  %v789_v61 = vadd.f32 %v1066_v52, %v701_v57  ;;  %v854_v8 = vmul.f32 %v841_v7, %v798_v0 }
 0x22e   : > { %v780_v58 = vpop.f32.mrf.mxu1 }
 0x22f   : > { %v857_v60 = vadd.f32 %v856_v54, %v850_v53  ;;  %v781_v62 = vadd.f32 %v780_v58, %v691_v32  ;;  %v852_v1 = vmul.f32 %v831_v46, %v796_v56  ;;  %v799_v5 = vmax.f32 %v789_v61, 0.0 }
 0x231   : > { %v858_v2 = vadd.f32 %v857_v60, %v851_v59  ;;  %v797_v3 = vmax.f32 %v781_v62, 0.0  ;;  %v855_v11 = vmul.f32 %v846_v10, %v799_v5 }
 0x233   : > { %v859_v4 = vadd.f32 %v858_v2, %v852_v1  ;;  %v853_v6 = vmul.f32 %v836_v63, %v797_v3 }
 0x235   : > { %v860_v9 = vadd.f32 %v859_v4, %v853_v6 }
 0x237   : > { %v861_v16 = vadd.f32 %v860_v9, %v854_v8 }
 0x239   : > { %v862_v18 = vadd.f32 %v861_v16, %v855_v11 }
 0x23b   : > { %v863_v19 = vrot.slane %v862_v18, 4 }
 0x23d   : > { %v864_v14 = vadd.f32 %v863_v19, %v862_v18 }
 0x23f   : > { %v865_v21 = vrot.slane %v864_v14, 2 }
 0x241   : > { %v866_v12 = vadd.f32 %v865_v21, %v864_v14 }
 0x243   : > { %v867_v13 = vrot.slane %v866_v12, 1 }
 0x245   : > { %v868_v24 = vadd.f32 %v867_v13, %v866_v12 }
 0x247   : > { %v879_v25 = vadd.f32 %v878_v23, %v868_v24 }
 0x249   : > { %v880_v26 = vsub.f32 0.0, %v879_v25 }
 0x24b   : > { %v881_v27 = vmul.f32 1.442695, %v880_v26 }
 0x24d   : > { %1129 = vpow2.f32 %v881_v27 }
 0x25a   : > { %v1130_v28 = vpop.eup %1129 }
 0x25b   : > { %v883_v29 = vadd.f32 1.0, %v1130_v28 }
 0x25d   : > { %1131 = vrcp.f32 %v883_v29 }
 0x26a   : > { %v1132_v30 = vpop.eup %1131 }
 0x26b   : > { %885 = vst [vmem:[%s285_s22] sm:$0x1] %v1132_v30 }
 0x26c   : > { %1146 = shalt.err (!%p1143_p3)
}
 0x26d   : > { %s1147_s14 = scalar_lea.hbm %s1480_s6, 16  ;;  %s1151_s18 = scalar_lea.hbm %s1522_s7, 32 }
 0x26e   : > { %p1148_p4 = scmp.ne.s32.totalorder %s1480_s6, %s1147_s14  ;;  %p1152_p9 = scmp.lt.s32.totalorder %s1480_s6, %s1522_s7 }
 0x26f   : > { %p1153_p10 = scmp.lt.s32.totalorder %s1151_s18, %s1147_s14 }
 0x270   : > { %p1149_p7 = pnand %p1148_p4, %p1275_p5 }
 0x271   : > { %p1154_p11 = por %p1153_p10, %p1152_p9 }
 0x272   : > { %p1150_p8 = pneg %p1149_p7 }
 0x274   : > { %p1155_p12 = pnand %p1154_p11, %p1150_p8 }
 0x276   : > { %1158 = shalt.err (!%p1155_p12)
}
 0x277   : > { %1075 = dma.vmem_to_hbm [thread:$0]  (%p1275_p5), %s900_s23, 16, %s1480_s6, %s887_s30  }
 0x278 PF: > { %p1081_p13 = scmp.ge.s32.totalorder %s1193_s29, 2  ;;  %s911_s22 = sand.u32 1, %s1181_s26  }
 0x279   : > { %s912_s24 = scalar_lea.sflag [#allocation4], %s911_s22 }
 0x27a   : > { %p1078_p0 = pnand %p1081_p13, %p1279_p6 }
 0x27c   : > { %p1079_p1 = pneg %p1078_p0 }
 0x27e   : > { %1176 = dma.done.wait (%p1079_p1), %s912_s24, 16  }
 0x27f   : > { %1178 = vsyncadd (%p1079_p1), %s912_s24, 4294967280  ;;  %p19_p2 = scmp.ge.s32.totalorder %s1263_s8, 4   ;;  %s1525_s26 = smov %s1185_s27 }
 0x280   : > { %s1526_s27 = smov %s1189_s28  ;;  %s1527_s28 = smov %s1273_s11 }
 0x281   : > { %s1528_s29 = smov %s1263_s8  ;;  %21 = sbr.rel (!%p19_p2) target bundleno = 6 (0x6), region = 83 }
 0x286   :  { %916 = vsyncpa [#allocation4], 1 }
 0x287   :  { %918 = vsyncpa [#allocation4 + $0x1], 1 }

</bundles_post_ra>
